<compile_context>
chip_gen: v7x
topology: tpu7x:2x2x1
jax: 0.10.0
libtpu: 0.0.40
codegen_flags: <defaults>
</compile_context>

<pallas_src>
import math

import jax
import jax.numpy as jnp
from jax.experimental import pallas as pl
from jax.experimental.pallas import tpu as pltpu


_TARGET_BLOCK_BYTES = 2 * 1024 * 1024   # per output tile; ~12 MiB live w/ double-buffering
_VMEM_LIMIT_BYTES = 32 * 1024 * 1024    # explicit budget: safe on v5e / v6e / v7x (64 MiB phys)
_FAST_PATH_BYTES = 1 * 1024 * 1024      # below this, pallas_call launch overhead dominates


def _foldcut_kernel(x_ref, o_ref):
    # x_ref: (TO, 2, TR, TC) VMEM tile, o_ref: (TO, TR, TC). Pure VPU add under DMA.
    o_ref[...] = x_ref[:, 0, :, :] + x_ref[:, 1, :, :]


def _sublane_align(itemsize: int) -> int:
    # f32 -> 8, bf16/f16 -> 16, int8/fp8 -> 32 (sub-32-bit dtypes pack along sublanes).
    return max(8, 32 // max(1, itemsize))


def _factor_lane_dense(m: int, itemsize: int, align: int) -> tuple:
    """Split m contiguous elements into (rows, cols), cols a multiple of 128 if possible."""
    if m % 128 == 0:
        # Largest multiple-of-128 divisor that still lets one aligned row tile fit the budget.
        max_cols = max(128, _TARGET_BLOCK_BYTES // (align * itemsize))
        d_max = max(1, min(m // 128, max_cols // 128))
        for d in range(d_max, 0, -1):
            if (m // 128) % d == 0:
                return m // (128 * d), 128 * d
    # m not a multiple of 128: at least put a sublane-aligned factor into rows so
    # sublanes are dense; the lane dim stays partially masked.
    # TODO(synk): could instead pad the lane dim to 128 in the wrapper (costs an extra copy).
    a = align
    while a >= 2:
        if m % a == 0:
            return a, m // a
        a //= 2
    return 1, m


def _pick_row_tile(rows: int, cols: int, itemsize: int, align: int) -> int:
    """Row tile: multiple of `align` (or == rows) with the output tile under budget."""
    max_tr = max(1, _TARGET_BLOCK_BYTES // max(1, cols * itemsize))
    if max_tr >= rows:
        return rows
    # Largest aligned divisor of rows that fits the budget.
    t = (max_tr // align) * align
    while t >= align:
        if rows % t == 0:
            return t
        t -= align
    # No aligned divisor: bounded aligned tile, rely on cdiv partial last block
    # (safe for an elementwise add; OOB stores are masked).
    t = (max_tr // align) * align
    if t >= align:
        return min(rows, t)
    return min(rows, align)


def foldcut(x: jax.Array, dim: int = 0, *, force_pallas: bool = False) -> jax.Array:
    """Equivalent of `x1, x2 = x.chunk(2, dim); return x1 + x2`."""
    dim = dim % x.ndim
    n = x.shape[dim]
    if n % 2 != 0:
        raise ValueError("Foldcut requires an even size along the split dimension")
    half = n // 2
    out_shape = x.shape[:dim] + (half,) + x.shape[dim + 1:]

    def _jnp_path():
        x1, x2 = jnp.split(x, 2, axis=dim)
        return x1 + x2

    itemsize = x.dtype.itemsize
    if not force_pallas and x.size * itemsize <= _FAST_PATH_BYTES:
        # Tiny tensors: pallas_call fixed overhead dominates -> plain XLA add.
        return _jnp_path()

    outer = math.prod(x.shape[:dim])
    inner = math.prod(x.shape[dim + 1:])
    m = half * inner
    align = _sublane_align(itemsize)

    rows, cols = _factor_lane_dense(m, itemsize, align)
    tr = _pick_row_tile(rows, cols, itemsize, align)
    tc = cols

    # Block several outer slices per step when one slice is far below the budget.
    if tr == rows:
        to = max(1, min(outer, _TARGET_BLOCK_BYTES // max(1, rows * cols * itemsize)))
    else:
        to = 1

    # v7x has 2 TensorCores: ensure a parallel axis has >= 2 blocks when the shape allows.
    if pl.cdiv(outer, to) * pl.cdiv(rows, tr) == 1:
        if outer >= 2:
            to = pl.cdiv(outer, 2)
        elif rows >= 2 * align:
            tr = max(align, ((rows // 2) // align) * align)

    # Safety valve: (input 2x + output 1x) double-buffered live bytes must fit the limit.
    live_bytes = 6 * to * tr * tc * itemsize
    if live_bytes > _VMEM_LIMIT_BYTES - 4 * 1024 * 1024:
        # TODO(synk): extreme aspect ratios (huge non-128-multiple lane dim) fall back to XLA.
        return _jnp_path()

    # Free contiguous refactorization: the chunk axis becomes the size-2 axis;
    # halves are bit-identical to torch.chunk(2, dim).
    x4 = x.reshape(outer, 2, rows, cols)
    grid = (pl.cdiv(outer, to), pl.cdiv(rows, tr))

    out3 = pl.pallas_call(
        _foldcut_kernel,
        out_shape=jax.ShapeDtypeStruct((outer, rows, cols), x.dtype),
        grid=grid,
        in_specs=[pl.BlockSpec((to, 2, tr, tc), lambda o, i: (o, 0, i, 0))],
        out_specs=pl.BlockSpec((to, tr, tc), lambda o, i: (o, i, 0)),
        compiler_params=pltpu.CompilerParams(
            dimension_semantics=("parallel", "parallel"),
            vmem_limit_bytes=_VMEM_LIMIT_BYTES),
        cost_estimate=pl.CostEstimate(
            flops=x.size // 2,
            transcendentals=0,
            bytes_accessed=int(1.5 * x.size * itemsize)),
    )(x4)

    return out3.reshape(out_shape)


def _check(x, dim, *, force_pallas=True):
    y = foldcut(x, dim=dim, force_pallas=force_pallas)
    jax.block_until_ready(y)
    x1, x2 = jnp.split(x, 2, axis=dim)
    ref = x1 + x2
    assert y.shape == ref.shape, (y.shape, ref.shape)
    assert jnp.allclose(y.astype(jnp.float32), ref.astype(jnp.float32),
                        atol=1e-6, rtol=1e-6), f"mismatch vs reference (dim={dim})"


if __name__ == "__main__":
    key = jax.random.PRNGKey(0)
    # NCHW-style input consistent with the module's common usage.
    x = jax.random.normal(key, (2, 4, 16, 16), dtype=jnp.float32)
    _check(x, dim=0)    # batch split (module default)
    _check(x, dim=1)    # channel split (common NCHW case)
    _check(x, dim=-1)   # trailing-axis split (degenerate lane-dim case)

    # bf16 input exercises dtype-aware sublane alignment.
    x_bf16 = jax.random.normal(jax.random.PRNGKey(1), (2, 8, 16, 16), dtype=jnp.bfloat16)
    _check(x_bf16, dim=1)

    # Slightly larger tensor to exercise outer-axis blocking and a multi-step grid.
    x_big = jax.random.normal(jax.random.PRNGKey(2), (4, 8, 32, 128), dtype=jnp.float32)
    _check(x_big, dim=1)

    # Exercise the wrapper fast path (no Pallas launch) once as well.
    _check(x, dim=1, force_pallas=False)

    print("KERNEL_OK")
</pallas_src>

<mosaic_0001>
module attributes {stable_mosaic.version = 11 : i64} {
  func.func @_foldcut_kernel(%arg0: i32, %arg1: i32, %arg2: memref<1x2x1x1024xf32, #tpu.memory_space<vmem>>, %arg3: memref<1x1x1024xf32, #tpu.memory_space<vmem>>) attributes {dimension_semantics = [#tpu.dimension_semantics<parallel>, #tpu.dimension_semantics<parallel>], iteration_bounds = array<i64: 1, 1>, scalar_prefetch = 0 : i64, scratch_operands = 0 : i64, tpu.core_type = #tpu.core_type<tc>, window_params = [{transform_indices = @transform_0, window_bounds = array<i64: 1, 2, 1, 1024>}, {transform_indices = @transform_1, window_bounds = array<i64: 1, 1, 1024>}]} {
    %c0 = arith.constant 0 : index
    %c0_0 = arith.constant 0 : index
    %c0_1 = arith.constant 0 : index
    %c0_2 = arith.constant 0 : index
    %0 = vector.load %arg2[%c0, %c0_0, %c0_1, %c0_2] : memref<1x2x1x1024xf32, #tpu.memory_space<vmem>>, vector<1x1x1x1024xf32>
    %1 = vector.shape_cast %0 : vector<1x1x1x1024xf32> to vector<1x1x1024xf32>
    %c0_3 = arith.constant 0 : index
    %c1 = arith.constant 1 : index
    %c0_4 = arith.constant 0 : index
    %c0_5 = arith.constant 0 : index
    %2 = vector.load %arg2[%c0_3, %c1, %c0_4, %c0_5] : memref<1x2x1x1024xf32, #tpu.memory_space<vmem>>, vector<1x1x1x1024xf32>
    %3 = vector.shape_cast %2 : vector<1x1x1x1024xf32> to vector<1x1x1024xf32>
    %4 = arith.addf %1, %3 : vector<1x1x1024xf32>
    %c0_6 = arith.constant 0 : index
    %c0_7 = arith.constant 0 : index
    %c0_8 = arith.constant 0 : index
    %5 = vector.load %arg3[%c0_6, %c0_7, %c0_8] : memref<1x1x1024xf32, #tpu.memory_space<vmem>>, vector<1x1x1024xf32>
    tpu.vector_store %arg3[%c0_6, %c0_7, %c0_8], %4 {strides = array<i32>} : memref<1x1x1024xf32, #tpu.memory_space<vmem>>, vector<1x1x1024xf32>,
    return
  }
  func.func @transform_0(%arg0: i32, %arg1: i32) -> (i32, i32, i32, i32) {
    %c0_i32 = arith.constant 0 : i32
    %c0_i32_0 = arith.constant 0 : i32
    %c0_i32_1 = arith.constant 0 : i32
    return %arg0, %c0_i32, %arg1, %c0_i32_0 : i32, i32, i32, i32
  }
  func.func @transform_1(%arg0: i32, %arg1: i32) -> (i32, i32, i32) {
    %c0_i32 = arith.constant 0 : i32
    %c0_i32_0 = arith.constant 0 : i32
    return %arg0, %arg1, %c0_i32 : i32, i32, i32
  }
}

</mosaic_0001>

<bundles_post_ra>
// kernel: tpu_custom_call.1
= control target key start
LH: loop header
LB: loop body
LE: loop exit
PB: predicated region body
PF: predicated region fallthrough
CT: control target
= control target key end

     0   :  { %6 = vsyncpa [#allocation3], 0  ;;  %s133_s0 = inlined_call_operand.hbm [shape: f32[1,2,1,1024], index: 0, kind: input, shape index: {}]   ;;  %s134_s1 = inlined_call_operand.hbm [shape: f32[1,1,1024], index: 1, kind: output, shape index: {}]  }
   0x1   :  { %7 = vsyncpa [#allocation4], 0  ;;  %s95_s6 = smov [#allocation2]   ;;  %s47_s10 = scalar_lea.hbm %s133_s0, 256 }
   0x2   :  { %s13_s7 = sshll.u32 %s95_s6, 4  ;;  %p48_p0 = scmp.ne.s32.totalorder %s133_s0, %s47_s10  ;;  %s14_s7 = int_to_ptr.vmem [resolvable:$true] %s13_s7 }
   0x3   :  { %p51_p1 = scmp.lt.u32.totalorder %s47_s10, %s133_s0 }
   0x5   :  { %p53_p2 = pnand %p51_p1, %p48_p0 }
   0x7   :  { %56 = shalt.err (!%p53_p2)
}
   0x8   :  { %s57_s15 = scalar_lea.vmem %s14_s7, 256  ;;  %p62_p4 = scmp.lt.s32.totalorder %s14_s7, %s14_s7 }
   0x9   :  { %p58_p3 = scmp.ne.s32.totalorder %s14_s7, %s57_s15  ;;  %p63_p5 = scmp.lt.s32.totalorder %s57_s15, %s57_s15 }
   0xb   :  { %p64_p6 = por %p63_p5, %p62_p4 }
   0xd   :  { %p65_p7 = pnand %p64_p6, %p58_p3 }
   0xf   :  { %68 = shalt.err (!%p65_p7)
}
  0x10   :  { %s96_s16 = smov 128   ;;  %s97_s17 = smov 8  }
  0x11   :  { %19 = dma.hbm_to_vmem [thread:$0]  %s133_s0, 256, %s14_s7, [#allocation3], %s96_s16, %s96_s16, %s97_s17  }
  0x12   :  { %91 = dma.done.wait [#allocation3], 256  }
  0x13   :  { %92 = vsyncadd [#allocation3], 4294967040  ;;  %s98_s20 = smov [#allocation5]   ;;  %v23_v0 = vld [vmem:[#allocation2] sm:$0xff]  ;;  %v25_v1 = vld [vmem:[#allocation2 + $0x8] sm:$0xff] }
  0x14   :  { %s34_s21 = sshll.u32 %s98_s20, 4  ;;  %v26_v2 = vadd.f32 %v25_v1, %v23_v0  ;;  %s35_s21 = int_to_ptr.vmem [resolvable:$true] %s34_s21 }
  0x15   :  { %s69_s22 = scalar_lea.vmem %s35_s21, 128  ;;  %p74_p9 = scmp.lt.s32.totalorder %s35_s21, %s35_s21 }
  0x16   :  { %27 = vst [vmem:[#allocation5] sm:$0xff] %v26_v2  ;;  %p70_p8 = scmp.ne.s32.totalorder %s35_s21, %s69_s22  ;;  %p75_p10 = scmp.lt.s32.totalorder %s69_s22, %s69_s22 }
  0x18   :  { %p76_p11 = por %p75_p10, %p74_p9 }
  0x1a   :  { %p77_p12 = pnand %p76_p11, %p70_p8 }
  0x1c   :  { %80 = shalt.err (!%p77_p12)
}
  0x1d   :  { %s81_s0 = scalar_lea.hbm %s134_s1, 128 }
  0x1e   :  { %p82_p13 = scmp.ne.s32.totalorder %s134_s1, %s81_s0  ;;  %p85_p0 = scmp.lt.u32.totalorder %s81_s0, %s134_s1 }
  0x20   :  { %p87_p1 = pnand %p85_p0, %p82_p13 }
  0x22   :  { %90 = shalt.err (!%p87_p1)
}
  0x23   :  { %37 = dma.vmem_to_hbm [thread:$0]  %s35_s21, 128, %s134_s1, [#allocation4]  }
  0x24   :  { %93 = dma.done.wait [#allocation4], 128  }
  0x25   :  { %94 = vsyncadd [#allocation4], 4294967168 }
  0x26   :  { %41 = vsyncpa [#allocation3], 1 }
  0x27   :  { %42 = vsyncpa [#allocation4], 1 }

</bundles_post_ra>
